<compile_context>
chip_gen: v6e
topology: v6e:2x2x1
jax: 0.10.0
libtpu: 0.0.40
codegen_flags: <defaults>
</compile_context>

<pallas_src>
import jax
import jax.numpy as jnp
from jax.experimental import pallas as pl
from jax.experimental.pallas import tpu as pltpu


# ----------------------------------------------------------------------------
# Kernel
# ----------------------------------------------------------------------------
def _lineart_kernel(w_ref, x_ref, o_ref, acc_ref):
    # w tile: (tm, tk), x tile: (tn, tk), out tile: (tm, tn).
    @pl.when(pl.program_id(2) == 0)
    def _init():
        acc_ref[...] = jnp.zeros_like(acc_ref)

    # Contract the last (K) dims of both tiles: (tm,tk) x (tn,tk) -> (tm,tn).
    # The MXU handles the transposed contraction natively (no XLU relayout).
    acc_ref[...] += jax.lax.dot_general(
        w_ref[...],
        x_ref[...],
        dimension_numbers=(((1,), (1,)), ((), ())),
        preferred_element_type=jnp.float32,
    )

    @pl.when(pl.program_id(2) == pl.num_programs(2) - 1)
    def _store():
        o_ref[...] = acc_ref[...].astype(o_ref.dtype)


# ----------------------------------------------------------------------------
# Wrapper helpers
# ----------------------------------------------------------------------------
def _round_up(x, m):
    return ((x + m - 1) // m) * m


def _vmem_limit_bytes():
    """Generation-aware scoped-VMEM budget."""
    try:
        cap = int(pltpu.get_tpu_info().vmem_capacity_bytes)
    except Exception:
        cap = 64 * 1024 * 1024  # conservative (v7x per-core physical VMEM)
    # ~3/4 of physical, capped at 96 MiB: 96 MiB on 128-MiB parts (v5e/v6e),
    # 48 MiB on v7x's 64 MiB.
    return min((cap * 3) // 4, 96 * 1024 * 1024)


def _select_tiles(dim_out, N, dim_in, in_bytes, out_bytes, vmem_limit,
                  tm=None, tn=None, tk=None):
    m_r = _round_up(dim_out, 128)
    n_r = _round_up(N, 128)
    k_r = _round_up(dim_in, 128)

    if tm is None:
        tm = min(512, m_r)
    if tn is None:
        # For modest N keep the whole (padded) N in one tile: x streams from
        # HBM exactly once; only W tiles re-stream.
        tn = n_r if n_r <= 1024 else 512
    if tk is None:
        tk = min(512, k_r)
    tm, tn, tk = min(tm, m_r), min(tn, n_r), min(tk, k_r)

    # v7x megacore: if the whole problem would be a single output block, split
    # M in two so both TensorCores get a "parallel" block.
    if m_r <= tm and n_r <= tn and m_r >= 256:
        tm = _round_up((m_r + 1) // 2, 128)

    # Double-buffered inputs + double-buffered output + f32 accumulator must
    # fit the scoped-VMEM budget; shrink K first, then N, then M.
    def vmem_need(a, b, c):
        return (2 * (a * c + b * c) * in_bytes
                + 2 * a * b * out_bytes
                + a * b * 4)

    budget = vmem_limit - (2 << 20)  # headroom for compiler-internal scratch
    while vmem_need(tm, tn, tk) > budget and tk > 128:
        tk = max(128, _round_up(tk // 2, 128))
    while vmem_need(tm, tn, tk) > budget and tn > 128:
        tn = max(128, _round_up(tn // 2, 128))
    while vmem_need(tm, tn, tk) > budget and tm > 128:
        tm = max(128, _round_up(tm // 2, 128))

    return tm, tn, tk


# ----------------------------------------------------------------------------
# Public entry points
# ----------------------------------------------------------------------------
def linear_t_pallas(x, w, *, compute_dtype=None, out_dtype=None,
                    tm=None, tn=None, tk=None):
    """x: (N, dim_in), w: (dim_out, dim_in) -> (dim_out, N) via Pallas."""
    N, dim_in = x.shape
    dim_out, dim_in_w = w.shape
    assert dim_in == dim_in_w
    out_dtype = jnp.dtype(out_dtype if out_dtype is not None else x.dtype)

    # Optional reduced-precision compute (e.g. bf16) with f32 accumulation;
    # caller-visible output dtype is preserved.
    if compute_dtype is not None:
        compute_dtype = jnp.dtype(compute_dtype)
        if x.dtype != compute_dtype:
            x = x.astype(compute_dtype)
        if w.dtype != compute_dtype:
            w = w.astype(compute_dtype)

    in_bytes = jnp.dtype(w.dtype).itemsize
    out_bytes = out_dtype.itemsize
    vmem_limit = _vmem_limit_bytes()

    tm, tn, tk = _select_tiles(dim_out, N, dim_in, in_bytes, out_bytes,
                               vmem_limit, tm, tn, tk)

    m_pad = _round_up(dim_out, tm)
    n_pad = _round_up(N, tn)
    k_pad = _round_up(dim_in, tk)

    # Pad only when actually unaligned (aligned shapes pay no extra HBM pass).
    # Zero padding on K contributes nothing to the reduction; M/N overhang is
    # sliced off the output below.
    if (m_pad, k_pad) != (dim_out, dim_in):
        w_p = jnp.pad(w, ((0, m_pad - dim_out), (0, k_pad - dim_in)))
    else:
        w_p = w
    if (n_pad, k_pad) != (N, dim_in):
        x_p = jnp.pad(x, ((0, n_pad - N), (0, k_pad - dim_in)))
    else:
        x_p = x

    grid = (m_pad // tm, n_pad // tn, k_pad // tk)

    flops = 2 * m_pad * n_pad * k_pad
    bytes_accessed = (
        m_pad * k_pad * in_bytes * (n_pad // tn)    # W streamed once per N tile
        + n_pad * k_pad * in_bytes * (m_pad // tm)  # x streamed once per M tile
        + m_pad * n_pad * out_bytes                 # output written once
    )

    out_p = pl.pallas_call(
        _lineart_kernel,
        out_shape=jax.ShapeDtypeStruct((m_pad, n_pad), out_dtype),
        grid_spec=pltpu.PrefetchScalarGridSpec(
            num_scalar_prefetch=0,
            grid=grid,
            in_specs=[
                pl.BlockSpec((tm, tk), lambda i, j, k: (i, k)),  # W  (M, K)
                pl.BlockSpec((tn, tk), lambda i, j, k: (j, k)),  # x  (N, K)
            ],
            out_specs=pl.BlockSpec((tm, tn), lambda i, j, k: (i, j)),
            scratch_shapes=[pltpu.VMEM((tm, tn), jnp.float32)],
        ),
        compiler_params=pltpu.CompilerParams(
            dimension_semantics=("parallel", "parallel", "arbitrary"),
            vmem_limit_bytes=vmem_limit,
        ),
        cost_estimate=pl.CostEstimate(
            flops=flops, transcendentals=0, bytes_accessed=bytes_accessed
        ),
    )(w_p, x_p)

    return out_p[:dim_out, :N]


_MIN_PALLAS_FLOPS = 1 << 20  # below this, XLA's fused matmul wins


def linear_t(x, w, *, compute_dtype=None):
    """x: (N, dim_in), w: (dim_out, dim_in) -> (dim_out, N)."""
    N, dim_in = x.shape
    dim_out = w.shape[0]
    if 2 * N * dim_in * dim_out < _MIN_PALLAS_FLOPS:
        # Tiny problem: per-call/per-step overhead dwarfs the compute.
        cd = jnp.dtype(compute_dtype) if compute_dtype is not None else x.dtype
        return (x.astype(cd) @ w.astype(cd).T).T.astype(x.dtype)
    return linear_t_pallas(x, w, compute_dtype=compute_dtype)


# ----------------------------------------------------------------------------
# Self-test
# ----------------------------------------------------------------------------
if __name__ == "__main__":
    # Small but non-trivial, deliberately unaligned shapes: exercises the
    # padding path, multi-block M (megacore split), and K accumulation, while
    # being large enough to route to the Pallas kernel.
    dim_in, dim_out, N = 384, 320, 136

    key = jax.random.PRNGKey(0)
    k_w, k_x = jax.random.split(key)

    # nn.Linear-style init (uniform with bound 1/sqrt(dim_in)), no bias.
    bound = 1.0 / (dim_in ** 0.5)
    w = jax.random.uniform(k_w, (dim_out, dim_in), jnp.float32, -bound, bound)
    x = jax.random.uniform(k_x, (N, dim_in), jnp.float32, -1.0, 1.0)

    # Reference: (x @ W.T).T at highest precision.
    ref = jnp.dot(x, w.T, precision=jax.lax.Precision.HIGHEST).T

    # f32 compute path (tight tolerance).
    out_f32 = jax.block_until_ready(linear_t(x, w))
    assert out_f32.shape == (dim_out, N), out_f32.shape
    assert out_f32.dtype == jnp.float32
    assert jnp.allclose(out_f32, ref, atol=1e-4, rtol=1e-4), "f32 mismatch"

    # bf16 compute path (halved HBM traffic, f32 accumulation; looser tol).
    out_bf16 = jax.block_until_ready(linear_t(x, w, compute_dtype=jnp.bfloat16))
    assert out_bf16.shape == (dim_out, N), out_bf16.shape
    assert out_bf16.dtype == jnp.float32  # caller-visible dtype preserved
    assert jnp.allclose(out_bf16, ref, atol=3e-2, rtol=3e-2), "bf16 mismatch"

    print("KERNEL_OK")
</pallas_src>

<mosaic_0001>
module attributes {stable_mosaic.version = 11 : i64} {
  func.func @_lineart_kernel(%arg0: i32, %arg1: i32, %arg2: i32, %arg3: memref<256x384xf32, #tpu.memory_space<vmem>>, %arg4: memref<256x384xf32, #tpu.memory_space<vmem>>, %arg5: memref<256x256xf32, #tpu.memory_space<vmem>>, %arg6: memref<256x256xf32, #tpu.memory_space<vmem>>) attributes {dimension_semantics = [#tpu.dimension_semantics<parallel>, #tpu.dimension_semantics<parallel>, #tpu.dimension_semantics<arbitrary>], iteration_bounds = array<i64: 2, 1, 1>, scalar_prefetch = 0 : i64, scratch_operands = 1 : i64, tpu.core_type = #tpu.core_type<tc>, window_params = [{transform_indices = @transform_0, window_bounds = array<i64: 256, 384>}, {transform_indices = @transform_1, window_bounds = array<i64: 256, 384>}, {transform_indices = @transform_2, window_bounds = array<i64: 256, 256>}]} {
    %c0_i32 = arith.constant 0 : i32
    %0 = arith.cmpi eq, %arg2, %c0_i32 : i32
    %1 = arith.extui %0 : i1 to i32
    %c0_i32_0 = arith.constant 0 : i32
    %2 = arith.cmpi ne, %1, %c0_i32_0 : i32
    scf.if %2 {
      %cst_10 = arith.constant 0.000000e+00 : f32
      %12 = vector.broadcast %cst_10 : f32 to vector<256x256xf32>
      %c0_11 = arith.constant 0 : index
      %c0_12 = arith.constant 0 : index
      %13 = vector.load %arg6[%c0_11, %c0_12] : memref<256x256xf32, #tpu.memory_space<vmem>>, vector<256x256xf32>
      tpu.vector_store %arg6[%c0_11, %c0_12], %12 {strides = array<i32>} : memref<256x256xf32, #tpu.memory_space<vmem>>, vector<256x256xf32>,
    } else {
    }
    %c0 = arith.constant 0 : index
    %c0_1 = arith.constant 0 : index
    %3 = vector.load %arg6[%c0, %c0_1] : memref<256x256xf32, #tpu.memory_space<vmem>>, vector<256x256xf32>
    %c0_2 = arith.constant 0 : index
    %c0_3 = arith.constant 0 : index
    %4 = vector.load %arg3[%c0_2, %c0_3] : memref<256x384xf32, #tpu.memory_space<vmem>>, vector<256x384xf32>
    %c0_4 = arith.constant 0 : index
    %c0_5 = arith.constant 0 : index
    %5 = vector.load %arg4[%c0_4, %c0_5] : memref<256x384xf32, #tpu.memory_space<vmem>>, vector<256x384xf32>
    %cst = arith.constant dense<0.000000e+00> : vector<256x256xf32>
    %6 = tpu.matmul %4, %5, %cst {dimension_numbers = #tpu.dot_dimension_numbers<[1], [1], [0], [0], [0, 0, 1, 0], [], []>} : vector<256x384xf32>, vector<256x384xf32>, vector<256x256xf32> -> vector<256x256xf32>
    %7 = arith.addf %3, %6 : vector<256x256xf32>
    %c0_6 = arith.constant 0 : index
    %c0_7 = arith.constant 0 : index
    %8 = vector.load %arg6[%c0_6, %c0_7] : memref<256x256xf32, #tpu.memory_space<vmem>>, vector<256x256xf32>
    tpu.vector_store %arg6[%c0_6, %c0_7], %7 {strides = array<i32>} : memref<256x256xf32, #tpu.memory_space<vmem>>, vector<256x256xf32>,
    %c0_i32_8 = arith.constant 0 : i32
    %9 = arith.cmpi eq, %arg2, %c0_i32_8 : i32
    %10 = arith.extui %9 : i1 to i32
    %c0_i32_9 = arith.constant 0 : i32
    %11 = arith.cmpi ne, %10, %c0_i32_9 : i32
    scf.if %11 {
      %c0_10 = arith.constant 0 : index
      %c0_11 = arith.constant 0 : index
      %12 = vector.load %arg6[%c0_10, %c0_11] : memref<256x256xf32, #tpu.memory_space<vmem>>, vector<256x256xf32>
      %c0_12 = arith.constant 0 : index
      %c0_13 = arith.constant 0 : index
      %13 = vector.load %arg5[%c0_12, %c0_13] : memref<256x256xf32, #tpu.memory_space<vmem>>, vector<256x256xf32>
      tpu.vector_store %arg5[%c0_12, %c0_13], %12 {strides = array<i32>} : memref<256x256xf32, #tpu.memory_space<vmem>>, vector<256x256xf32>,
    } else {
    }
    return
  }
  func.func @transform_0(%arg0: i32, %arg1: i32, %arg2: i32) -> (i32, i32) {
    %c0_i32 = arith.constant 0 : i32
    return %arg0, %arg2 : i32, i32
  }
  func.func @transform_1(%arg0: i32, %arg1: i32, %arg2: i32) -> (i32, i32) {
    %c0_i32 = arith.constant 0 : i32
    return %arg1, %arg2 : i32, i32
  }
  func.func @transform_2(%arg0: i32, %arg1: i32, %arg2: i32) -> (i32, i32) {
    %c0_i32 = arith.constant 0 : i32
    return %arg0, %arg1 : i32, i32
  }
}

</mosaic_0001>

<bundles_post_ra>
// kernel: tpu_custom_call.1
= control target key start
LH: loop header
LB: loop body
LE: loop exit
PB: predicated region body
PF: predicated region fallthrough
CT: control target
= control target key end

     0   :  { %7 = vsyncpa [#allocation4], 0  ;;  %s2254_s0 = inlined_call_operand.hbm [shape: f32[512,384], index: 0, kind: input, shape index: {}]   ;;  %s2255_s1 = inlined_call_operand.hbm [shape: f32[256,384], index: 1, kind: input, shape index: {}]   ;;  %s2256_s2 = inlined_call_operand.hbm [shape: f32[512,256], index: 2, kind: output, shape index: {}]  }
   0x1   :  { %9 = vsyncpa [#allocation4 + $0x1], 0 }
   0x2   :  { %10 = vsyncpa [#allocation7], 0 }
   0x3   :  { %11 = vsyncpa [#allocation5], 0 }
   0x4   :  { %13 = vsyncpa [#allocation5 + $0x1], 0  ;;  %s1798_s9 = smov 0   ;;  %s1800_s10 = smov 0  }
   0x5   :  { %s1802_s11 = smov 0   ;;  %s1804_s12 = smov 0  }
   0x6   :  { %s1806_s13 = smov 0   ;;  %s1808_s14 = smov 0  }
   0x7 LB: > { %s1441_s15 = sadd.s32 4294967295, %s1774_s14   ;;  %s1442_s16 = sadd.s32 4294967294, %s1774_s14   ;;  %s1774_s14 = sphi %s1808_s14, %s19_s14   ;;  %s1770_s13 = sphi %s1806_s13, %s2272_s13   ;;  %s1766_s12 = sphi %s1804_s12, %s2271_s12   ;;  %s1762_s11 = sphi %s1802_s11, %s2270_s11   ;;  %s1758_s10 = sphi %s1800_s10, %s2269_s10   ;;  %s1754_s9 = sphi %s1798_s9, %s2268_s9  }
   0x8   : > { %p60_p0 = scmp.ne.s32.totalorder %s1758_s10, %s1754_s9  ;;  %p1832_p1 = scmp.eq.s32.totalorder %s1441_s15, 0 }
   0x9   : > { %p1836_p2 = scmp.eq.s32.totalorder %s1441_s15, 1  ;;  %p120_p3 = scmp.eq.s32.totalorder %s1442_s16, 1 }
   0xa   : > { %p1842_p4 = por %p1832_p1, %p60_p0  ;;  %p1443_p5 = scmp.ge.s32.totalorder %s1774_s14, 1 }
   0xb   : > { %p1847_p6 = por %p120_p3, %p60_p0  ;;  %p127_p7 = scmp.lt.s32.totalorder %s1774_s14, 3 }
   0xc   : > { %s2260_s19 = scalar_select %p1842_p4, 1, 0 }
   0xd   : > { %s2261_s20 = scalar_select %p1847_p6, 1, 0 }
   0xe   : > { %p1852_p8 = pnand %p1443_p5, %p127_p7  ;;  %s1776_s22 = smov [#allocation6]  }
   0xf   : > { %s145_s23 = sshll.u32 %s1776_s22, 4  ;;  %p1445_p10 = scmp.ge.s32.totalorder %s1774_s14, 2  ;;  %s146_s23 = int_to_ptr.vmem [resolvable:$true] %s145_s23 }
  0x10   : > { %p1567_p9 = pneg %p1852_p8  ;;  %s38_s25 = sadd.s32 1, %s1770_s13 }
  0x11   : > { %s1647_s26 = scalar_lea.vmem %s146_s23, 12288  ;;  %p1655_p5 = scmp.lt.s32.totalorder %s146_s23, %s146_s23 }
  0x12   : > { %p1861_p11 = pnand %p1567_p9, %p1832_p1  ;;  %p1648_p13 = scmp.ne.s32.totalorder %s146_s23, %s1647_s26 }
  0x13   : > { %p1656_p7 = scmp.lt.s32.totalorder %s1647_s26, %s1647_s26 }
  0x14   : > { %p1638_p12 = pneg %p1861_p11 }
  0x15   : > { %p1657_p6 = por %p1656_p7, %p1655_p5 }
  0x16   : > { %p1650_p0 = pnand %p1648_p13, %p1638_p12 }
  0x18   : > { %p1651_p3 = pneg %p1650_p0 }
  0x1a   : > { %p1658_p4 = pnand %p1657_p6, %p1651_p3 }
  0x1c   : > { %1661 = shalt.err (!%p1658_p4)
}
  0x1d   : > { %s1777_s27 = smov 384   ;;  %s1778_s28 = smov 24  }
  0x1e   : > { %1570 = dma.hbm_to_vmem [thread:$0]  (!%p1861_p11), %s2255_s1, 12288, %s146_s23, [#allocation7], %s1777_s27, %s1777_s27, %s1778_s28  }
  0x1f   : > { %p40_p4 = scmp.ge.s32.totalorder %s38_s25, 2  ;;  %s47_s3 = sadd.s32 1, %s1762_s11 }
  0x20   : > { %p54_p6 = scmp.ne.s32.totalorder %s1762_s11, %s1758_s10  ;;  %p55_p9 = scmp.eq.s32.totalorder %s1774_s14, 0 }
  0x21   : > { %s2274_s25 = smov (%p40_p4, %s38_s25), 0  ;;  %p1580_p0 = scmp.lt.s32.totalorder %s1774_s14, 2 }
  0x22   : > { %p56_p12 = por %p55_p9, %p54_p6  ;;  %p1884_p13 = por %p1836_p2, %p54_p6 }
  0x23   : > { %s42_s5 = ssub.s32 %s1770_s13, %s2274_s25  ;;  %s159_s6 = sand.u32 1, %s1762_s11  }
  0x24   : > { %p45_p3 = scmp.eq.s32.totalorder %s42_s5, 0  ;;  %s1556_s7 = smul.u32 768, %s159_s6 }
  0x25   : > { %s1557_s15 = smul.u32 12288, %s1770_s13  ;;  %p1896_p11 = pnand %p1580_p0, %p56_p12 }
  0x26   : > { %s1893_s8 = scalar_select %p45_p3, %s1762_s11, %s47_s3  }
  0x27   : > { %s163_s16 = scalar_lea.vmem [#allocation3], %s1556_s7  ;;  %s172_s26 = scalar_lea.hbm %s2254_s0, %s1557_s15 }
  0x28   : > { %s173_s22 = sshll.u32 %s163_s16, 4  ;;  %s160_s29 = scalar_lea.sflag [#allocation4], %s159_s6  ;;  %s174_s22 = int_to_ptr.vmem [resolvable:$true] %s173_s22 }
  0x29   : > { %p1664_p2 = pneg %p1896_p11  ;;  %s1675_s30 = scalar_lea.vmem %s174_s22, 12288 }
  0x2a   : > { %p1676_p5 = scmp.ne.s32.totalorder %s174_s22, %s1675_s30  ;;  %s1779_s3 = smov [#allocation3]  }
  0x2b   : > { %s1680_s5 = sshll.u32 %s1779_s3, 4  ;;  %s1681_s5 = int_to_ptr.vmem [resolvable:$false] %s1680_s5 }
  0x2c   : > { %p1678_p7 = pnand %p1676_p5, %p1664_p2  ;;  %s1682_s7 = scalar_lea.vmem %s1681_s5, 24576 }
  0x2d   : > { %p1683_p6 = scmp.lt.s32.totalorder %s174_s22, %s1681_s5  ;;  %p1684_p9 = scmp.lt.s32.totalorder %s1682_s7, %s1675_s30 }
  0x2e   : > { %p1679_p4 = pneg %p1678_p7 }
  0x2f   : > { %p1685_p12 = por %p1684_p9, %p1683_p6 }
  0x31   : > { %p1686_p0 = pnand %p1685_p12, %p1679_p4 }
  0x33   : > { %1689 = shalt.err (!%p1686_p0)
}
  0x34   : > { %1574 = dma.hbm_to_vmem [thread:$0]  (!%p1896_p11), %s172_s26, 12288, %s174_s22, %s160_s29, %s1777_s27, %s1777_s27, %s1778_s28  }
  0x35   : > { %185 = sbr.rel (%p1852_p8) target bundleno = 525 (0x20d), region = 28  ;;  %s1913_s6 = sand.u32 (!%p1852_p8), 1, %s1758_s10  }
  0x36   : > { %s1558_s15 = smul.u32 (!%p1852_p8), 768, %s1913_s6  ;;  %s188_s16 = scalar_lea.sflag (!%p1852_p8), [#allocation4], %s1913_s6 }
  0x37   : > { %p2266_p3 = scmp.ne.s32.totalorder (!%p1852_p8), %s2260_s19, 0 }
  0x38   : > { %s1917_s24 = scalar_lea.vmem (!%p1852_p8), [#allocation3], %s1558_s15 }
  0x3a   : > { %1741 = dma.done.wait (%p2266_p3), %s188_s16, 12288  }
  0x3b   : > { %1743 = vsyncadd (%p2266_p3), %s188_s16, 4294955008 }
  0x3c   : > { %1745 = dma.done.wait (%p1832_p1), [#allocation7], 12288  }
  0x3d   : > { %1747 = vsyncadd (%p1832_p1), [#allocation7], 4294955008  ;;  %v496_v0 = vld [vmem:[#allocation6 + $0x170] sm:$0xff]  ;;  %v495_v1 = vld [vmem:[#allocation6 + $0x168] sm:$0xff]  ;;  %s1451_s17 = sshll.u32 %s1913_s6, 9  ;;  %s1459_s21 = sshll.u32 %s1766_s12, 13 }
  0x3e   : > { %v493_v2 = vld [vmem:[#allocation6 + $0x158] sm:$0xff]  ;;  %546 = vmatprep.subr.mxu0 %v496_v0  ;;  %v492_v3 = vld [vmem:[#allocation6 + $0x150] sm:$0xff]  ;;  %v490_v4 = vld [vmem:[#allocation6 + $0x140] sm:$0xff]  ;;  %s2064_s19 = scalar_lea.vmem [#allocation8], %s1451_s17  ;;  %s2202_s23 = scalar_lea.hbm %s2256_s2, %s1459_s21 }
  0x3f   : > { %547 = vmatpush1.xpose.msra.mxu0 %v495_v1  ;;  %v489_v5 = vld [vmem:[#allocation6 + $0x138] sm:$0xff]  ;;  %v487_v6 = vld [vmem:[#allocation6 + $0x128] sm:$0xff]  ;;  %v486_v8 = vld [vmem:[#allocation6 + $0x120] sm:$0xff]  ;;  %s1336_s27 = sshll.u32 %s2064_s19, 4  ;;  %s1320_s12 = scalar_lea.sflag [#allocation5], %s1913_s6  ;;  %s2204_s27 = int_to_ptr.vmem [resolvable:$true] %s1336_s27 }
  0x40   : > { %548 = vmatprep.subr.mxu0 %v493_v2  ;;  %v545_v7 = vld [vmem:[#allocation6 + $0x2f8] sm:$0xff]  ;;  %v484_v10 = vld [vmem:[#allocation6 + $0x110] sm:$0xff]  ;;  %v542_v11 = vld [vmem:[#allocation6 + $0x2e0] sm:$0xff]  ;;  %s1690_s18 = scalar_lea.vmem %s2204_s27, 8192  ;;  %s1780_s26 = smov [#allocation8]  }
  0x41   : > { %1460 = vmatprep.subr.mxu1 %v545_v7  ;;  %v497_v9 = vld [vmem:[#allocation6 + $0x178] sm:$0xff]  ;;  %v494_v12 = vld [vmem:[#allocation6 + $0x160] sm:$0xff]  ;;  %v539_v13 = vld [vmem:[#allocation6 + $0x2c8] sm:$0xff]  ;;  %p1691_p1 = scmp.ne.s32.totalorder %s2204_s27, %s1690_s18  ;;  %s1694_s29 = sshll.u32 %s1780_s26, 4  ;;  %s1695_s29 = int_to_ptr.vmem [resolvable:$false] %s1694_s29 }
  0x42   : > { %1461 = vmatpush3.xpose.msra.mxu1 %v497_v9  ;;  %v483_v14 = vld [vmem:[#allocation6 + $0x108] sm:$0xff]  ;;  %v481_v15 = vld [vmem:[#allocation6 + $0xf8] sm:$0xff]  ;;  %v536_v17 = vld [vmem:[#allocation6 + $0x2b0] sm:$0xff]  ;;  %s1696_s30 = scalar_lea.vmem %s1695_s29, 16384  ;;  %p1697_p2 = scmp.lt.s32.totalorder %s2204_s27, %s1695_s29 }
  0x43   : > { %549 = vmatpush1.xpose.msra.mxu0 %v492_v3  ;;  %1462 = vmatprep.subr.mxu1 %v542_v11  ;;  %v491_v16 = vld [vmem:[#allocation6 + $0x148] sm:$0xff]  ;;  %v480_v18 = vld [vmem:[#allocation6 + $0xf0] sm:$0xff]  ;;  %v478_v19 = vld [vmem:[#allocation6 + $0xe0] sm:$0xff]  ;;  %p1692_p8 = pnand %p1691_p1, %p1884_p13  ;;  %p1698_p5 = scmp.lt.s32.totalorder %s1696_s30, %s1690_s18 }
  0x44   : > { %550 = vmatprep.subr.mxu0 %v490_v4  ;;  %v488_v20 = vld [vmem:[#allocation6 + $0x130] sm:$0xff]  ;;  %v533_v21 = vld [vmem:[#allocation6 + $0x298] sm:$0xff]  ;;  %v475_v23 = vld [vmem:[#allocation6 + $0xc8] sm:$0xff] }
  0x45   : > { %v477_v22 = vld [vmem:[#allocation6 + $0xd8] sm:$0xff]  ;;  %v530_v25 = vld [vmem:[#allocation6 + $0x280] sm:$0xff]  ;;  %v472_v27 = vld [vmem:[#allocation6 + $0xb0] sm:$0xff]  ;;  %p1693_p11 = pneg %p1692_p8  ;;  %p1699_p7 = por %p1698_p5, %p1697_p2 }
  0x46   : > { %1463 = vmatpush3.xpose.msra.mxu1 %v494_v12  ;;  %v485_v24 = vld [vmem:[#allocation6 + $0x118] sm:$0xff]  ;;  %v474_v26 = vld [vmem:[#allocation6 + $0xc0] sm:$0xff]  ;;  %v527_v29 = vld [vmem:[#allocation6 + $0x268] sm:$0xff] }
  0x47   : > { %551 = vmatpush1.xpose.msra.mxu0 %v489_v5  ;;  %1464 = vmatprep.subr.mxu1 %v539_v13  ;;  %v482_v28 = vld [vmem:[#allocation6 + $0x100] sm:$0xff]  ;;  %v471_v30 = vld [vmem:[#allocation6 + $0xa8] sm:$0xff]  ;;  %v469_v31 = vld [vmem:[#allocation6 + $0x98] sm:$0xff]  ;;  %p1700_p4 = pnand %p1699_p7, %p1693_p11 }
  0x48   : > { %552 = vmatprep.subr.mxu0 %v487_v6  ;;  %v1928_v32 = vld [vmem:[%s1917_s24 + $0x10] sm:$0xff]  ;;  %v355_v33 = vld [vmem:[%s1917_s24 + $0x8] sm:$0xff]  ;;  %v466_v37 = vld [vmem:[#allocation6 + $0x80] sm:$0xff] }
  0x49   : > { %v479_v34 = vld [vmem:[#allocation6 + $0xe8] sm:$0xff]  ;;  %1492 = vmatprep.mubr.f32.mxu1 %v1928_v32  ;;  %v524_v35 = vld [vmem:[#allocation6 + $0x250] sm:$0xff]  ;;  %610 = vmatprep.mubr.f32.mxu0 %v355_v33  ;;  %v521_v39 = vld [vmem:[#allocation6 + $0x238] sm:$0xff] }
  0x4a   : > { %1465 = vmatpush3.xpose.msra.mxu1 %v491_v16  ;;  %v468_v36 = vld [vmem:[#allocation6 + $0x90] sm:$0xff]  ;;  %v465_v40 = vld [vmem:[#allocation6 + $0x78] sm:$0xff]  ;;  %v463_v41 = vld [vmem:[#allocation6 + $0x68] sm:$0xff] }
  0x4b   : > { %553 = vmatpush1.xpose.msra.mxu0 %v486_v8  ;;  %1466 = vmatprep.subr.mxu1 %v536_v17  ;;  %v476_v38 = vld [vmem:[#allocation6 + $0xd0] sm:$0xff]  ;;  %v473_v42 = vld [vmem:[#allocation6 + $0xb8] sm:$0xff]  ;;  %v518_v43 = vld [vmem:[#allocation6 + $0x220] sm:$0xff] }
  0x4c   : > { %554 = vmatprep.subr.mxu0 %v484_v10  ;;  %v462_v44 = vld [vmem:[#allocation6 + $0x60] sm:$0xff]  ;;  %v460_v45 = vld [vmem:[#allocation6 + $0x50] sm:$0xff]  ;;  %v515_v47 = vld [vmem:[#allocation6 + $0x208] sm:$0xff] }
  0x4d   : > { %v470_v46 = vld [vmem:[#allocation6 + $0xa0] sm:$0xff]  ;;  %v459_v48 = vld [vmem:[#allocation6 + $0x48] sm:$0xff]  ;;  %v457_v49 = vld [vmem:[#allocation6 + $0x38] sm:$0xff] }
  0x4e   : > { %1467 = vmatpush3.xpose.msra.mxu1 %v488_v20  ;;  %v467_v50 = vld [vmem:[#allocation6 + $0x88] sm:$0xff]  ;;  %v512_v51 = vld [vmem:[#allocation6 + $0x1f0] sm:$0xff]  ;;  %v454_v53 = vld [vmem:[#allocation6 + $0x20] sm:$0xff] }
  0x4f   : > { %555 = vmatpush1.xpose.msra.mxu0 %v483_v14  ;;  %1468 = vmatprep.subr.mxu1 %v533_v21  ;;  %v456_v52 = vld [vmem:[#allocation6 + $0x30] sm:$0xff]  ;;  %v509_v55 = vld [vmem:[#allocation6 + $0x1d8] sm:$0xff]  ;;  %v451_v57 = vld [vmem:[#allocation6 + $0x8] sm:$0xff] }
  0x50   : > { %556 = vmatprep.subr.mxu0 %v481_v15  ;;  %v464_v54 = vld [vmem:[#allocation6 + $0x70] sm:$0xff]  ;;  %v453_v56 = vld [vmem:[#allocation6 + $0x18] sm:$0xff]  ;;  %v506_v59 = vld [vmem:[#allocation6 + $0x1c0] sm:$0xff] }
  0x51   : > { %v461_v58 = vld [vmem:[#allocation6 + $0x58] sm:$0xff]  ;;  %v450_v60 = vld [vmem:[#allocation6] sm:$0xff]  ;;  %v544_v61 = vld [vmem:[#allocation6 + $0x2f0] sm:$0xff] }
  0x52   : > { %1469 = vmatpush3.xpose.msra.mxu1 %v485_v24  ;;  %v458_v62 = vld [vmem:[#allocation6 + $0x40] sm:$0xff]  ;;  %v503_v63 = vld [vmem:[#allocation6 + $0x1a8] sm:$0xff]  ;;  %v541_v1 = vld [vmem:[#allocation6 + $0x2d8] sm:$0xff] }
  0x53   : > { %557 = vmatpush1.xpose.msra.mxu0 %v480_v18  ;;  %1470 = vmatprep.subr.mxu1 %v530_v25  ;;  %v543_v0 = vld [vmem:[#allocation6 + $0x2e8] sm:$0xff]  ;;  %v500_v3 = vld [vmem:[#allocation6 + $0x190] sm:$0xff]  ;;  %v538_v5 = vld [vmem:[#allocation6 + $0x2c0] sm:$0xff] }
  0x54   : > { %558 = vmatprep.subr.mxu0 %v478_v19  ;;  %v455_v2 = vld [vmem:[#allocation6 + $0x28] sm:$0xff]  ;;  %v540_v4 = vld [vmem:[#allocation6 + $0x2d0] sm:$0xff]  ;;  %v537_v7 = vld [vmem:[#allocation6 + $0x2b8] sm:$0xff] }
  0x55   : > { %v452_v6 = vld [vmem:[#allocation6 + $0x10] sm:$0xff]  ;;  %v535_v8 = vld [vmem:[#allocation6 + $0x2a8] sm:$0xff]  ;;  %v534_v10 = vld [vmem:[#allocation6 + $0x2a0] sm:$0xff] }
  0x56   : > { %1471 = vmatpush3.xpose.msra.mxu1 %v482_v28  ;;  %v359_v9 = vld [vmem:[%s1917_s24 + $0x28] sm:$0xff]  ;;  %v532_v11 = vld [vmem:[#allocation6 + $0x290] sm:$0xff]  ;;  %v362_v12 = vld [vmem:[%s1917_s24 + $0x40] sm:$0xff] }
  0x57   : > { %559 = vmatpush1.xpose.msra.mxu0 %v477_v22  ;;  %1472 = vmatprep.subr.mxu1 %v527_v29  ;;  %v531_v13 = vld [vmem:[#allocation6 + $0x288] sm:$0xff]  ;;  %v529_v14 = vld [vmem:[#allocation6 + $0x278] sm:$0xff]  ;;  %v528_v16 = vld [vmem:[#allocation6 + $0x270] sm:$0xff] }
  0x58   : > { %560 = vmatprep.subr.mxu0 %v475_v23  ;;  %v365_v15 = vld [vmem:[%s1917_s24 + $0x58] sm:$0xff]  ;;  %v526_v17 = vld [vmem:[#allocation6 + $0x260] sm:$0xff]  ;;  %v368_v18 = vld [vmem:[%s1917_s24 + $0x70] sm:$0xff] }
  0x59   : > { %v525_v19 = vld [vmem:[#allocation6 + $0x258] sm:$0xff]  ;;  %v523_v20 = vld [vmem:[#allocation6 + $0x248] sm:$0xff]  ;;  %v522_v22 = vld [vmem:[#allocation6 + $0x240] sm:$0xff] }
  0x5a   : > { %1473 = vmatpush3.xpose.msra.mxu1 %v479_v34  ;;  %v371_v21 = vld [vmem:[%s1917_s24 + $0x88] sm:$0xff]  ;;  %v520_v23 = vld [vmem:[#allocation6 + $0x230] sm:$0xff]  ;;  %v374_v24 = vld [vmem:[%s1917_s24 + $0xa0] sm:$0xff] }
  0x5b   : > { %561 = vmatpush1.xpose.msra.mxu0 %v474_v26  ;;  %1474 = vmatprep.subr.mxu1 %v524_v35  ;;  %v519_v25 = vld [vmem:[#allocation6 + $0x228] sm:$0xff]  ;;  %v517_v26 = vld [vmem:[#allocation6 + $0x218] sm:$0xff]  ;;  %v516_v28 = vld [vmem:[#allocation6 + $0x210] sm:$0xff] }
  0x5c   : > { %562 = vmatprep.subr.mxu0 %v472_v27  ;;  %v377_v27 = vld [vmem:[%s1917_s24 + $0xb8] sm:$0xff]  ;;  %v514_v29 = vld [vmem:[#allocation6 + $0x200] sm:$0xff]  ;;  %v383_v33 = vld [vmem:[%s1917_s24 + $0xe8] sm:$0xff] }
  0x5d   : > { %v510_v34 = vld [vmem:[#allocation6 + $0x1e0] sm:$0xff]  ;;  %v508_v35 = vld [vmem:[#allocation6 + $0x1d0] sm:$0xff] }
  0x5e   : > { %1475 = vmatpush3.xpose.msra.mxu1 %v476_v38  ;;  %v505_v38 = vld [vmem:[#allocation6 + $0x1b8] sm:$0xff] }
  0x5f   : > { %563 = vmatpush1.xpose.msra.mxu0 %v471_v30  ;;  %1476 = vmatprep.subr.mxu1 %v521_v39  ;;  %v380_v30 = vld [vmem:[%s1917_s24 + $0xd0] sm:$0xff]  ;;  %v389_v39 = vld [vmem:[%s1917_s24 + $0x118] sm:$0xff] }
  0x60   : > { %564 = vmatprep.subr.mxu0 %v469_v31  ;;  %v513_v31 = vld [vmem:[#allocation6 + $0x1f8] sm:$0xff] }
  0x62   : > { %1477 = vmatpush3.xpose.msra.mxu1 %v473_v42  ;;  %v392_v42 = vld [vmem:[%s1917_s24 + $0x130] sm:$0xff] }
  0x63   : > { %565 = vmatpush1.xpose.msra.mxu0 %v468_v36  ;;  %1478 = vmatprep.subr.mxu1 %v518_v43  ;;  %v386_v36 = vld [vmem:[%s1917_s24 + $0x100] sm:$0xff]  ;;  %v501_v43 = vld [vmem:[#allocation6 + $0x198] sm:$0xff] }
  0x64   : > { %566 = vmatprep.subr.mxu0 %v466_v37  ;;  %v507_v37 = vld [vmem:[#allocation6 + $0x1c8] sm:$0xff] }
  0x66   : > { %1479 = vmatpush3.xpose.msra.mxu1 %v470_v46  ;;  %v498_v46 = vld [vmem:[#allocation6 + $0x180] sm:$0xff] }
  0x67   : > { %567 = vmatpush1.xpose.msra.mxu0 %v465_v40  ;;  %1480 = vmatprep.subr.mxu1 %v515_v47  ;;  %v504_v40 = vld [vmem:[#allocation6 + $0x1b0] sm:$0xff]  ;;  %v398_v47 = vld [vmem:[%s1917_s24 + $0x160] sm:$0xff] }
  0x68   : > { %568 = vmatprep.subr.mxu0 %v463_v41  ;;  %v502_v41 = vld [vmem:[#allocation6 + $0x1a0] sm:$0xff] }
  0x6a   : > { %1481 = vmatpush3.xpose.msra.mxu1 %v467_v50  ;;  %v401_v50 = vld [vmem:[%s1917_s24 + $0x178] sm:$0xff] }
  0x6b   : > { %569 = vmatpush1.xpose.msra.mxu0 %v462_v44  ;;  %1482 = vmatprep.subr.mxu1 %v512_v51  ;;  %v499_v44 = vld [vmem:[#allocation6 + $0x188] sm:$0xff]  ;;  %v357_v51 = vld [vmem:[%s1917_s24 + $0x18] sm:$0xff] }
  0x6c   : > { %570 = vmatprep.subr.mxu0 %v460_v45  ;;  %v395_v45 = vld [vmem:[%s1917_s24 + $0x148] sm:$0xff] }
  0x6e   : > { %1483 = vmatpush3.xpose.msra.mxu1 %v464_v54  ;;  %v360_v54 = vld [vmem:[%s1917_s24 + $0x30] sm:$0xff] }
  0x6f   : > { %571 = vmatpush1.xpose.msra.mxu0 %v459_v48  ;;  %1484 = vmatprep.subr.mxu1 %v509_v55  ;;  %v354_v48 = vld [vmem:[%s1917_s24] sm:$0xff]  ;;  %v364_v55 = vld [vmem:[%s1917_s24 + $0x50] sm:$0xff] }
  0x70   : > { %572 = vmatprep.subr.mxu0 %v457_v49  ;;  %v358_v49 = vld [vmem:[%s1917_s24 + $0x20] sm:$0xff] }
  0x72   : > { %1485 = vmatpush3.xpose.msra.mxu1 %v461_v58  ;;  %v367_v58 = vld [vmem:[%s1917_s24 + $0x68] sm:$0xff] }
  0x73   : > { %573 = vmatpush1.xpose.msra.mxu0 %v456_v52  ;;  %1486 = vmatprep.subr.mxu1 %v506_v59  ;;  %v361_v52 = vld [vmem:[%s1917_s24 + $0x38] sm:$0xff]  ;;  %v410_v59 = vld [vmem:[%s1917_s24 + $0x1c0] sm:$0xff] }
  0x74   : > { %574 = vmatprep.subr.mxu0 %v454_v53  ;;  %v404_v53 = vld [vmem:[%s1917_s24 + $0x190] sm:$0xff] }
  0x76   : > { %1487 = vmatpush3.xpose.msra.mxu1 %v458_v62  ;;  %v413_v62 = vld [vmem:[%s1917_s24 + $0x1d8] sm:$0xff] }
  0x77   : > { %575 = vmatpush1.xpose.msra.mxu0 %v453_v56  ;;  %1488 = vmatprep.subr.mxu1 %v503_v63  ;;  %v407_v56 = vld [vmem:[%s1917_s24 + $0x1a8] sm:$0xff]  ;;  %v369_v63 = vld [vmem:[%s1917_s24 + $0x78] sm:$0xff] }
  0x78   : > { %576 = vmatprep.subr.mxu0 %v451_v57  ;;  %v363_v57 = vld [vmem:[%s1917_s24 + $0x48] sm:$0xff] }
  0x7a   : > { %1489 = vmatpush3.xpose.msra.mxu1 %v455_v2  ;;  %v372_v2 = vld [vmem:[%s1917_s24 + $0x90] sm:$0xff] }
  0x7b   : > { %577 = vmatpush1.xpose.msra.mxu0 %v450_v60  ;;  %1490 = vmatprep.subr.mxu1 %v500_v3  ;;  %v366_v60 = vld [vmem:[%s1917_s24 + $0x60] sm:$0xff]  ;;  %v376_v3 = vld [vmem:[%s1917_s24 + $0xb0] sm:$0xff] }
  0x7c   : > { %578 = vmatprep.subr.mxu0 %v544_v61  ;;  %v370_v61 = vld [vmem:[%s1917_s24 + $0x80] sm:$0xff] }
  0x7e   : > { %1491 = vmatpush3.xpose.msra.mxu1 %v452_v6  ;;  %v379_v6 = vld [vmem:[%s1917_s24 + $0xc8] sm:$0xff] }
  0x7f   : > { %579 = vmatpush2.xpose.msra.mxu0 %v543_v0  ;;  %v373_v0 = vld [vmem:[%s1917_s24 + $0x98] sm:$0xff] }
  0x80   : > { %580 = vmatprep.subr.mxu0 %v541_v1  ;;  %v416_v1 = vld [vmem:[%s1917_s24 + $0x1f0] sm:$0xff] }
  0x81   : > { %1493 = vmatmul.mubr.f32.vlgmr.msra.gmra.mxu1 %v1928_v32  ;;  %v511_v32 = vld [vmem:[#allocation6 + $0x1e8] sm:$0xff] }
  0x82   : > { %1494 = vmatprep.mubr.f32.mxu1 %v359_v9 }
  0x83   : > { %581 = vmatpush2.xpose.msra.mxu0 %v540_v4  ;;  %v419_v4 = vld [vmem:[%s1917_s24 + $0x208] sm:$0xff] }
  0x84   : > { %582 = vmatprep.subr.mxu0 %v538_v5  ;;  %v375_v5 = vld [vmem:[%s1917_s24 + $0xa8] sm:$0xff] }
  0x85   : > { %1495 = vmatmul.mubr.f32.gmra.mxu1 %v359_v9  ;;  %v382_v9 = vld [vmem:[%s1917_s24 + $0xe0] sm:$0xff] }
  0x86   : > { %1496 = vmatprep.mubr.f32.mxu1 %v362_v12 }
  0x87   : > { %583 = vmatpush2.xpose.msra.mxu0 %v537_v7  ;;  %v422_v7 = vld [vmem:[%s1917_s24 + $0x220] sm:$0xff] }
  0x88   : > { %584 = vmatprep.subr.mxu0 %v535_v8  ;;  %v378_v8 = vld [vmem:[%s1917_s24 + $0xc0] sm:$0xff] }
  0x89   : > { %1497 = vmatmul.mubr.f32.gmra.mxu1 %v362_v12  ;;  %v385_v12 = vld [vmem:[%s1917_s24 + $0xf8] sm:$0xff] }
  0x8a   : > { %1498 = vmatprep.mubr.f32.mxu1 %v365_v15 }
  0x8b   : > { %585 = vmatpush2.xpose.msra.mxu0 %v534_v10  ;;  %v425_v10 = vld [vmem:[%s1917_s24 + $0x238] sm:$0xff] }
  0x8c   : > { %586 = vmatprep.subr.mxu0 %v532_v11  ;;  %v381_v11 = vld [vmem:[%s1917_s24 + $0xd8] sm:$0xff] }
  0x8d   : > { %1499 = vmatmul.mubr.f32.gmra.mxu1 %v365_v15  ;;  %v388_v15 = vld [vmem:[%s1917_s24 + $0x110] sm:$0xff] }
  0x8e   : > { %1500 = vmatprep.mubr.f32.mxu1 %v368_v18 }
  0x8f   : > { %587 = vmatpush2.xpose.msra.mxu0 %v531_v13  ;;  %v428_v13 = vld [vmem:[%s1917_s24 + $0x250] sm:$0xff] }
  0x90   : > { %588 = vmatprep.subr.mxu0 %v529_v14  ;;  %v384_v14 = vld [vmem:[%s1917_s24 + $0xf0] sm:$0xff] }
  0x91   : > { %1501 = vmatmul.mubr.f32.gmra.mxu1 %v368_v18  ;;  %v391_v18 = vld [vmem:[%s1917_s24 + $0x128] sm:$0xff] }
  0x92   : > { %1502 = vmatprep.mubr.f32.mxu1 %v371_v21 }
  0x93   : > { %589 = vmatpush2.xpose.msra.mxu0 %v528_v16  ;;  %v431_v16 = vld [vmem:[%s1917_s24 + $0x268] sm:$0xff] }
  0x94   : > { %590 = vmatprep.subr.mxu0 %v526_v17  ;;  %v387_v17 = vld [vmem:[%s1917_s24 + $0x108] sm:$0xff] }
  0x95   : > { %1503 = vmatmul.mubr.f32.gmra.mxu1 %v371_v21  ;;  %v394_v21 = vld [vmem:[%s1917_s24 + $0x140] sm:$0xff] }
  0x96   : > { %1504 = vmatprep.mubr.f32.mxu1 %v374_v24 }
  0x97   : > { %591 = vmatpush2.xpose.msra.mxu0 %v525_v19  ;;  %v434_v19 = vld [vmem:[%s1917_s24 + $0x280] sm:$0xff] }
  0x98   : > { %592 = vmatprep.subr.mxu0 %v523_v20  ;;  %v390_v20 = vld [vmem:[%s1917_s24 + $0x120] sm:$0xff] }
  0x99   : > { %1505 = vmatmul.mubr.f32.gmra.mxu1 %v374_v24  ;;  %v397_v24 = vld [vmem:[%s1917_s24 + $0x158] sm:$0xff] }
  0x9a   : > { %1506 = vmatprep.mubr.f32.mxu1 %v377_v27 }
  0x9b   : > { %593 = vmatpush2.xpose.msra.mxu0 %v522_v22  ;;  %v437_v22 = vld [vmem:[%s1917_s24 + $0x298] sm:$0xff] }
  0x9c   : > { %594 = vmatprep.subr.mxu0 %v520_v23  ;;  %v393_v23 = vld [vmem:[%s1917_s24 + $0x138] sm:$0xff] }
  0x9d   : > { %1507 = vmatmul.mubr.f32.gmra.mxu1 %v377_v27  ;;  %v400_v27 = vld [vmem:[%s1917_s24 + $0x170] sm:$0xff] }
  0x9e   : > { %1508 = vmatprep.mubr.f32.mxu1 %v380_v30 }
  0x9f   : > { %595 = vmatpush2.xpose.msra.mxu0 %v519_v25  ;;  %v440_v25 = vld [vmem:[%s1917_s24 + $0x2b0] sm:$0xff] }
  0xa0   : > { %596 = vmatprep.subr.mxu0 %v517_v26  ;;  %v396_v26 = vld [vmem:[%s1917_s24 + $0x150] sm:$0xff] }
  0xa1   : > { %1509 = vmatmul.mubr.f32.gmra.mxu1 %v380_v30  ;;  %v403_v30 = vld [vmem:[%s1917_s24 + $0x188] sm:$0xff] }
  0xa2   : > { %1510 = vmatprep.mubr.f32.mxu1 %v383_v33 }
  0xa3   : > { %597 = vmatpush2.xpose.msra.mxu0 %v516_v28  ;;  %v443_v28 = vld [vmem:[%s1917_s24 + $0x2c8] sm:$0xff] }
  0xa4   : > { %598 = vmatprep.subr.mxu0 %v514_v29  ;;  %v399_v29 = vld [vmem:[%s1917_s24 + $0x168] sm:$0xff] }
  0xa5   : > { %1511 = vmatmul.mubr.f32.gmra.mxu1 %v383_v33  ;;  %v406_v33 = vld [vmem:[%s1917_s24 + $0x1a0] sm:$0xff] }
  0xa6   : > { %1512 = vmatprep.mubr.f32.mxu1 %v386_v36 }
  0xa7   : > { %599 = vmatpush2.xpose.msra.mxu0 %v513_v31  ;;  %v446_v31 = vld [vmem:[%s1917_s24 + $0x2e0] sm:$0xff] }
  0xa8   : > { %600 = vmatprep.subr.mxu0 %v511_v32  ;;  %v402_v32 = vld [vmem:[%s1917_s24 + $0x180] sm:$0xff] }
  0xa9   : > { %1513 = vmatmul.mubr.f32.gmra.mxu1 %v386_v36  ;;  %v409_v36 = vld [vmem:[%s1917_s24 + $0x1b8] sm:$0xff] }
  0xaa   : > { %1514 = vmatprep.mubr.f32.mxu1 %v389_v39 }
  0xab   : > { %601 = vmatpush2.xpose.msra.mxu0 %v510_v34  ;;  %v449_v34 = vld [vmem:[%s1917_s24 + $0x2f8] sm:$0xff] }
  0xac   : > { %602 = vmatprep.subr.mxu0 %v508_v35  ;;  %v405_v35 = vld [vmem:[%s1917_s24 + $0x198] sm:$0xff] }
  0xad   : > { %1515 = vmatmul.mubr.f32.gmra.mxu1 %v389_v39  ;;  %v411_v39 = vld [vmem:[%s1917_s24 + $0x1c8] sm:$0xff] }
  0xae   : > { %1516 = vmatprep.mubr.f32.mxu1 %v392_v42 }
  0xaf   : > { %603 = vmatpush2.xpose.msra.mxu0 %v507_v37  ;;  %v408_v37 = vld [vmem:[%s1917_s24 + $0x1b0] sm:$0xff] }
  0xb0   : > { %604 = vmatprep.subr.mxu0 %v505_v38  ;;  %v412_v38 = vld [vmem:[%s1917_s24 + $0x1d0] sm:$0xff] }
  0xb1   : > { %1517 = vmatmul.mubr.f32.gmra.mxu1 %v392_v42  ;;  %v418_v42 = vld [vmem:[%s1917_s24 + $0x200] sm:$0xff] }
  0xb2   : > { %1518 = vmatprep.mubr.f32.mxu1 %v395_v45 }
  0xb3   : > { %605 = vmatpush2.xpose.msra.mxu0 %v504_v40  ;;  %v415_v40 = vld [vmem:[%s1917_s24 + $0x1e8] sm:$0xff] }
  0xb4   : > { %606 = vmatprep.subr.mxu0 %v502_v41  ;;  %v414_v41 = vld [vmem:[%s1917_s24 + $0x1e0] sm:$0xff] }
  0xb5   : > { %1519 = vmatmul.mubr.f32.gmra.mxu1 %v395_v45  ;;  %v420_v45 = vld [vmem:[%s1917_s24 + $0x210] sm:$0xff] }
  0xb6   : > { %1520 = vmatprep.mubr.f32.mxu1 %v398_v47 }
  0xb7   : > { %607 = vmatpush2.xpose.msra.mxu0 %v501_v43  ;;  %v417_v43 = vld [vmem:[%s1917_s24 + $0x1f8] sm:$0xff] }
  0xb8   : > { %608 = vmatprep.subr.mxu0 %v499_v44  ;;  %v421_v44 = vld [vmem:[%s1917_s24 + $0x218] sm:$0xff] }
  0xb9   : > { %1521 = vmatmul.mubr.f32.gmra.mxu1 %v398_v47  ;;  %v423_v47 = vld [vmem:[%s1917_s24 + $0x228] sm:$0xff] }
  0xba   : > { %1522 = vmatprep.mubr.f32.mxu1 %v401_v50 }
  0xbb   : > { %609 = vmatpush2.xpose.msra.mxu0 %v498_v46  ;;  %v424_v46 = vld [vmem:[%s1917_s24 + $0x230] sm:$0xff] }
  0xbd   : > { %1523 = vmatmul.mubr.f32.gmra.mxu1 %v401_v50  ;;  %v430_v50 = vld [vmem:[%s1917_s24 + $0x260] sm:$0xff] }
  0xbe   : > { %611 = vmatmul.mubr.f32.vlgmr.msra.gmra.mxu0 %v354_v48  ;;  %1524 = vmatprep.mubr.f32.mxu1 %v404_v53  ;;  %v427_v48 = vld [vmem:[%s1917_s24 + $0x248] sm:$0xff] }
  0xbf   : > { %616 = vmatprep.mubr.f32.mxu0 %v358_v49  ;;  %v426_v49 = vld [vmem:[%s1917_s24 + $0x240] sm:$0xff] }
  0xc1   : > { %1525 = vmatmul.mubr.f32.gmra.mxu1 %v404_v53  ;;  %v432_v53 = vld [vmem:[%s1917_s24 + $0x270] sm:$0xff] }
  0xc2   : > { %617 = vmatmul.mubr.f32.gmra.mxu0 %v357_v51  ;;  %1526 = vmatprep.mubr.f32.mxu1 %v407_v56  ;;  %v429_v51 = vld [vmem:[%s1917_s24 + $0x258] sm:$0xff] }
  0xc3   : > { %622 = vmatprep.mubr.f32.mxu0 %v361_v52  ;;  %v433_v52 = vld [vmem:[%s1917_s24 + $0x278] sm:$0xff] }
  0xc5   : > { %1527 = vmatmul.mubr.f32.gmra.mxu1 %v407_v56  ;;  %v439_v56 = vld [vmem:[%s1917_s24 + $0x2a8] sm:$0xff] }
  0xc6   : > { %623 = vmatmul.mubr.f32.gmra.mxu0 %v360_v54  ;;  %1528 = vmatprep.mubr.f32.mxu1 %v410_v59  ;;  %v436_v54 = vld [vmem:[%s1917_s24 + $0x290] sm:$0xff] }
  0xc7   : > { %628 = vmatprep.mubr.f32.mxu0 %v364_v55  ;;  %v435_v55 = vld [vmem:[%s1917_s24 + $0x288] sm:$0xff] }
  0xc9   : > { %1529 = vmatmul.mubr.f32.gmra.mxu1 %v410_v59  ;;  %v441_v59 = vld [vmem:[%s1917_s24 + $0x2b8] sm:$0xff] }
  0xca   : > { %629 = vmatmul.mubr.f32.gmra.mxu0 %v363_v57  ;;  %1530 = vmatprep.mubr.f32.mxu1 %v413_v62  ;;  %v438_v57 = vld [vmem:[%s1917_s24 + $0x2a0] sm:$0xff] }
  0xcb   : > { %634 = vmatprep.mubr.f32.mxu0 %v367_v58  ;;  %v442_v58 = vld [vmem:[%s1917_s24 + $0x2c0] sm:$0xff] }
  0xcd   : > { %1531 = vmatmul.mubr.f32.gmra.mxu1 %v413_v62  ;;  %v448_v62 = vld [vmem:[%s1917_s24 + $0x2f0] sm:$0xff] }
  0xce   : > { %635 = vmatmul.mubr.f32.gmra.mxu0 %v366_v60  ;;  %1532 = vmatprep.mubr.f32.mxu1 %v416_v1  ;;  %v445_v60 = vld [vmem:[%s1917_s24 + $0x2d8] sm:$0xff] }
  0xcf   : > { %640 = vmatprep.mubr.f32.mxu0 %v370_v61  ;;  %v444_v61 = vld [vmem:[%s1917_s24 + $0x2d0] sm:$0xff] }
  0xd1   : > { %1533 = vmatmul.mubr.f32.gmra.mxu1 %v416_v1 }
  0xd2   : > { %641 = vmatmul.mubr.f32.gmra.mxu0 %v369_v63  ;;  %1534 = vmatprep.mubr.f32.mxu1 %v419_v4  ;;  %v447_v63 = vld [vmem:[%s1917_s24 + $0x2e8] sm:$0xff] }
  0xd3   : > { %646 = vmatprep.mubr.f32.mxu0 %v373_v0 }
  0xd5   : > { %1535 = vmatmul.mubr.f32.gmra.mxu1 %v419_v4 }
  0xd6   : > { %647 = vmatmul.mubr.f32.gmra.mxu0 %v372_v2  ;;  %1536 = vmatprep.mubr.f32.mxu1 %v422_v7 }
  0xd7   : > { %652 = vmatprep.mubr.f32.mxu0 %v376_v3 }
  0xd9   : > { %1537 = vmatmul.mubr.f32.gmra.mxu1 %v422_v7 }
  0xda   : > { %653 = vmatmul.mubr.f32.gmra.mxu0 %v375_v5  ;;  %1538 = vmatprep.mubr.f32.mxu1 %v425_v10 }
  0xdb   : > { %658 = vmatprep.mubr.f32.mxu0 %v379_v6 }
  0xdd   : > { %1539 = vmatmul.mubr.f32.gmra.mxu1 %v425_v10 }
  0xde   : > { %659 = vmatmul.mubr.f32.gmra.mxu0 %v378_v8  ;;  %1540 = vmatprep.mubr.f32.mxu1 %v428_v13 }
  0xdf   : > { %664 = vmatprep.mubr.f32.mxu0 %v382_v9 }
  0xe1   : > { %1541 = vmatmul.mubr.f32.gmra.mxu1 %v428_v13 }
  0xe2   : > { %665 = vmatmul.mubr.f32.gmra.mxu0 %v381_v11  ;;  %1542 = vmatprep.mubr.f32.mxu1 %v431_v16 }
  0xe3   : > { %670 = vmatprep.mubr.f32.mxu0 %v385_v12 }
  0xe5   : > { %1543 = vmatmul.mubr.f32.gmra.mxu1 %v431_v16 }
  0xe6   : > { %671 = vmatmul.mubr.f32.gmra.mxu0 %v384_v14  ;;  %1544 = vmatprep.mubr.f32.mxu1 %v434_v19 }
  0xe7   : > { %676 = vmatprep.mubr.f32.mxu0 %v388_v15 }
  0xe9   : > { %1545 = vmatmul.mubr.f32.gmra.mxu1 %v434_v19 }
  0xea   : > { %677 = vmatmul.mubr.f32.gmra.mxu0 %v387_v17  ;;  %1546 = vmatprep.mubr.f32.mxu1 %v437_v22 }
  0xeb   : > { %682 = vmatprep.mubr.f32.mxu0 %v391_v18 }
  0xed   : > { %1547 = vmatmul.mubr.f32.gmra.mxu1 %v437_v22 }
  0xee   : > { %683 = vmatmul.mubr.f32.gmra.mxu0 %v390_v20  ;;  %1548 = vmatprep.mubr.f32.mxu1 %v440_v25 }
  0xef   : > { %688 = vmatprep.mubr.f32.mxu0 %v394_v21 }
  0xf1   : > { %1549 = vmatmul.mubr.f32.gmra.mxu1 %v440_v25 }
  0xf2   : > { %689 = vmatmul.mubr.f32.gmra.mxu0 %v393_v23  ;;  %1550 = vmatprep.mubr.f32.mxu1 %v443_v28 }
  0xf3   : > { %694 = vmatprep.mubr.f32.mxu0 %v397_v24 }
  0xf5   : > { %1551 = vmatmul.mubr.f32.gmra.mxu1 %v443_v28 }
  0xf6   : > { %695 = vmatmul.mubr.f32.gmra.mxu0 %v396_v26  ;;  %1552 = vmatprep.mubr.f32.mxu1 %v446_v31 }
  0xf7   : > { %700 = vmatprep.mubr.f32.mxu0 %v400_v27 }
  0xf9   : > { %1553 = vmatmul.mubr.f32.gmra.mxu1 %v446_v31 }
  0xfa   : > { %701 = vmatmul.mubr.f32.gmra.mxu0 %v399_v29  ;;  %1554 = vmatprep.mubr.f32.mxu1 %v449_v34 }
  0xfb   : > { %706 = vmatprep.mubr.f32.mxu0 %v403_v30 }
  0xfd   : > { %1555 = vmatmul.mubr.f32.gmra.mxu1 %v449_v34 }
  0xfe   : > { %707 = vmatmul.mubr.f32.gmra.mxu0 %v402_v32 }
  0xff   : > { %712 = vmatprep.mubr.f32.mxu0 %v406_v33 }
 0x102   : > { %713 = vmatmul.mubr.f32.gmra.mxu0 %v405_v35 }
 0x103   : > { %718 = vmatprep.mubr.f32.mxu0 %v409_v36 }
 0x106   : > { %719 = vmatmul.mubr.f32.gmra.mxu0 %v408_v37 }
 0x107   : > { %724 = vmatprep.mubr.f32.mxu0 %v412_v38 }
 0x10a   : > { %725 = vmatmul.mubr.f32.gmra.mxu0 %v411_v39 }
 0x10b   : > { %730 = vmatprep.mubr.f32.mxu0 %v415_v40 }
 0x10e   : > { %731 = vmatmul.mubr.f32.gmra.mxu0 %v414_v41 }
 0x10f   : > { %736 = vmatprep.mubr.f32.mxu0 %v418_v42 }
 0x112   : > { %737 = vmatmul.mubr.f32.gmra.mxu0 %v417_v43 }
 0x113   : > { %742 = vmatprep.mubr.f32.mxu0 %v421_v44 }
 0x116   : > { %743 = vmatmul.mubr.f32.gmra.mxu0 %v420_v45 }
 0x117   : > { %748 = vmatprep.mubr.f32.mxu0 %v424_v46 }
 0x11a   : > { %749 = vmatmul.mubr.f32.gmra.mxu0 %v423_v47 }
 0x11b   : > { %754 = vmatprep.mubr.f32.mxu0 %v427_v48 }
 0x11e   : > { %755 = vmatmul.mubr.f32.gmra.mxu0 %v426_v49 }
 0x11f   : > { %760 = vmatprep.mubr.f32.mxu0 %v430_v50 }
 0x122   : > { %761 = vmatmul.mubr.f32.gmra.mxu0 %v429_v51 }
 0x123   : > { %766 = vmatprep.mubr.f32.mxu0 %v433_v52 }
 0x126   : > { %767 = vmatmul.mubr.f32.gmra.mxu0 %v432_v53 }
 0x127   : > { %772 = vmatprep.mubr.f32.mxu0 %v436_v54 }
 0x12a   : > { %773 = vmatmul.mubr.f32.gmra.mxu0 %v435_v55 }
 0x12b   : > { %778 = vmatprep.mubr.f32.mxu0 %v439_v56 }
 0x12e   : > { %779 = vmatmul.mubr.f32.gmra.mxu0 %v438_v57 }
 0x12f   : > { %784 = vmatprep.mubr.f32.mxu0 %v442_v58 }
 0x132   : > { %785 = vmatmul.mubr.f32.gmra.mxu0 %v441_v59 }
 0x133   : > { %790 = vmatprep.mubr.f32.mxu0 %v445_v60 }
 0x136   : > { %791 = vmatmul.mubr.f32.gmra.mxu0 %v444_v61 }
 0x137   : > { %796 = vmatprep.mubr.f32.mxu0 %v448_v62 }
 0x13a   : > { %797 = vmatmul.mubr.f32.gmra.mxu0 %v447_v63 }
 0x141   : > { %v869_v0 = vpop.f32.mrf.mxu1 }
 0x143   : > { %v871_v1 = vpop.f32.mrf.mxu1 }
 0x145   : > { %v875_v2 = vpop.f32.mrf.mxu1 }
 0x147   : > { %v877_v3 = vpop.f32.mrf.mxu1 }
 0x149   : > { %v881_v4 = vpop.f32.mrf.mxu1 }
 0x14b   : > { %v883_v5 = vpop.f32.mrf.mxu1 }
 0x14d   : > { %v887_v6 = vpop.f32.mrf.mxu1 }
 0x14f   : > { %v889_v7 = vpop.f32.mrf.mxu1 }
 0x151   : > { %v893_v8 = vpop.f32.mrf.mxu1 }
 0x153   : > { %v895_v9 = vpop.f32.mrf.mxu1 }
 0x155   : > { %v899_v10 = vpop.f32.mrf.mxu1 }
 0x157   : > { %v2027_v11 = vpop.f32.mrf.mxu1 }
 0x159   : > { %v2029_v12 = vpop.f32.mrf.mxu1 }
 0x15b   : > { %v2031_v13 = vpop.f32.mrf.mxu1 }
 0x15d   : > { %v2033_v14 = vpop.f32.mrf.mxu1 }
 0x15f   : > { %v2035_v15 = vpop.f32.mrf.mxu1 }
 0x161   : > { %v2037_v16 = vpop.f32.mrf.mxu1 }
 0x163   : > { %v2039_v17 = vpop.f32.mrf.mxu1 }
 0x165   : > { %v2041_v18 = vpop.f32.mrf.mxu1 }
 0x167   : > { %v2043_v19 = vpop.f32.mrf.mxu1 }
 0x169   : > { %v2045_v20 = vpop.f32.mrf.mxu1 }
 0x16b   : > { %v2047_v21 = vpop.f32.mrf.mxu1 }
 0x16d   : > { %v2049_v22 = vpop.f32.mrf.mxu1 }
 0x16f   : > { %v2051_v23 = vpop.f32.mrf.mxu1 }
 0x171   : > { %v2053_v24 = vpop.f32.mrf.mxu1 }
 0x173   : > { %v2055_v25 = vpop.f32.mrf.mxu1 }
 0x175   : > { %v2058_v26 = vpop.f32.mrf.mxu1 }
 0x177   : > { %v2060_v28 = vpop.f32.mrf.mxu1 }
 0x179   : > { %v2062_v31 = vpop.f32.mrf.mxu1 }
 0x17b   : > { %v2067_v34 = vpop.f32.mrf.mxu1 }
 0x17d   : > { %v2070_v37 = vpop.f32.mrf.mxu1 }
 0x17e   : > { %v612_v27 = vpop.f32.mrf.mxu0 }
 0x17f   : > { %v870_v29 = vadd.f32 %v869_v0, %v612_v27  ;;  %v2073_v40 = vpop.f32.mrf.mxu1 }
 0x180   : > { %v614_v30 = vpop.f32.mrf.mxu0 }
 0x181   : > { %1255 = vst [vmem:[%s2064_s19] sm:$0xff] %v870_v29  ;;  %v872_v32 = vadd.f32 %v871_v1, %v614_v30  ;;  %v2076_v43 = vpop.f32.mrf.mxu1 }
 0x182   : > { %v618_v33 = vpop.f32.mrf.mxu0 }
 0x183   : > { %1256 = vst [vmem:[%s2064_s19 + $0x8] sm:$0xff] %v872_v32  ;;  %v876_v35 = vadd.f32 %v875_v2, %v618_v33  ;;  %v2079_v46 = vpop.f32.mrf.mxu1 }
 0x184   : > { %v620_v36 = vpop.f32.mrf.mxu0 }
 0x185   : > { %1257 = vst [vmem:[%s2064_s19 + $0x10] sm:$0xff] %v876_v35  ;;  %v878_v38 = vadd.f32 %v877_v3, %v620_v36  ;;  %v2082_v49 = vpop.f32.mrf.mxu1 }
 0x186   : > { %v624_v39 = vpop.f32.mrf.mxu0 }
 0x187   : > { %1258 = vst [vmem:[%s2064_s19 + $0x18] sm:$0xff] %v878_v38  ;;  %v882_v41 = vadd.f32 %v881_v4, %v624_v39  ;;  %v2085_v52 = vpop.f32.mrf.mxu1 }
 0x188   : > { %v626_v42 = vpop.f32.mrf.mxu0 }
 0x189   : > { %1259 = vst [vmem:[%s2064_s19 + $0x20] sm:$0xff] %v882_v41  ;;  %v884_v44 = vadd.f32 %v883_v5, %v626_v42  ;;  %v2088_v55 = vpop.f32.mrf.mxu1 }
 0x18a   : > { %v630_v45 = vpop.f32.mrf.mxu0 }
 0x18b   : > { %1260 = vst [vmem:[%s2064_s19 + $0x28] sm:$0xff] %v884_v44  ;;  %v888_v47 = vadd.f32 %v887_v6, %v630_v45  ;;  %v2092_v60 = vpop.f32.mrf.mxu1 }
 0x18c   : > { %v632_v48 = vpop.f32.mrf.mxu0 }
 0x18d   : > { %1261 = vst [vmem:[%s2064_s19 + $0x30] sm:$0xff] %v888_v47  ;;  %v890_v50 = vadd.f32 %v889_v7, %v632_v48  ;;  %v2098_v1 = vpop.f32.mrf.mxu1 }
 0x18e   : > { %v636_v51 = vpop.f32.mrf.mxu0 }
 0x18f   : > { %1262 = vst [vmem:[%s2064_s19 + $0x38] sm:$0xff] %v890_v50  ;;  %v894_v53 = vadd.f32 %v893_v8, %v636_v51  ;;  %v2104_v6 = vpop.f32.mrf.mxu1 }
 0x190   : > { %v638_v54 = vpop.f32.mrf.mxu0 }
 0x191   : > { %1263 = vst [vmem:[%s2064_s19 + $0x40] sm:$0xff] %v894_v53  ;;  %v896_v56 = vadd.f32 %v895_v9, %v638_v54 }
 0x192   : > { %v642_v57 = vpop.f32.mrf.mxu0 }
 0x193   : > { %1264 = vst [vmem:[%s2064_s19 + $0x48] sm:$0xff] %v896_v56  ;;  %v900_v58 = vadd.f32 %v899_v10, %v642_v57 }
 0x194   : > { %v644_v59 = vpop.f32.mrf.mxu0 }
 0x195   : > { %1265 = vst [vmem:[%s2064_s19 + $0x50] sm:$0xff] %v900_v58  ;;  %v902_v61 = vadd.f32 %v2027_v11, %v644_v59  ;;  %v2110_v11 = vpop.f32.mrf.mxu1 }
 0x196   : > { %v648_v62 = vpop.f32.mrf.mxu0 }
 0x197   : > { %1266 = vst [vmem:[%s2064_s19 + $0x58] sm:$0xff] %v902_v61  ;;  %v906_v63 = vadd.f32 %v2029_v12, %v648_v62 }
 0x198   : > { %v650_v0 = vpop.f32.mrf.mxu0 }
 0x199   : > { %1267 = vst [vmem:[%s2064_s19 + $0x60] sm:$0xff] %v906_v63  ;;  %v908_v2 = vadd.f32 %v2031_v13, %v650_v0 }
 0x19a   : > { %v654_v3 = vpop.f32.mrf.mxu0 }
 0x19b   : > { %1268 = vst [vmem:[%s2064_s19 + $0x68] sm:$0xff] %v908_v2  ;;  %v912_v4 = vadd.f32 %v2033_v14, %v654_v3 }
 0x19c   : > { %v656_v5 = vpop.f32.mrf.mxu0 }
 0x19d   : > { %1269 = vst [vmem:[%s2064_s19 + $0x70] sm:$0xff] %v912_v4  ;;  %v914_v7 = vadd.f32 %v2035_v15, %v656_v5  ;;  %v2116_v15 = vpop.f32.mrf.mxu1 }
 0x19e   : > { %v660_v8 = vpop.f32.mrf.mxu0 }
 0x19f   : > { %1270 = vst [vmem:[%s2064_s19 + $0x78] sm:$0xff] %v914_v7  ;;  %v918_v9 = vadd.f32 %v2037_v16, %v660_v8 }
 0x1a0   : > { %v662_v10 = vpop.f32.mrf.mxu0 }
 0x1a1   : > { %1271 = vst [vmem:[%s2064_s19 + $0x80] sm:$0xff] %v918_v9  ;;  %v920_v12 = vadd.f32 %v2039_v17, %v662_v10  ;;  %v2122_v17 = vpop.f32.mrf.mxu1 }
 0x1a2   : > { %v666_v13 = vpop.f32.mrf.mxu0 }
 0x1a3   : > { %1272 = vst [vmem:[%s2064_s19 + $0x88] sm:$0xff] %v920_v12  ;;  %v924_v14 = vadd.f32 %v2041_v18, %v666_v13 }
 0x1a4   : > { %v668_v27 = vpop.f32.mrf.mxu0 }
 0x1a5   : > { %1273 = vst [vmem:[%s2064_s19 + $0x90] sm:$0xff] %v924_v14  ;;  %v926_v29 = vadd.f32 %v2043_v19, %v668_v27  ;;  %v2128_v19 = vpop.f32.mrf.mxu1 }
 0x1a6   : > { %v672_v16 = vpop.f32.mrf.mxu0 }
 0x1a7   : > { %1274 = vst [vmem:[%s2064_s19 + $0x98] sm:$0xff] %v926_v29  ;;  %v930_v30 = vadd.f32 %v2045_v20, %v672_v16 }
 0x1a8   : > { %v674_v32 = vpop.f32.mrf.mxu0 }
 0x1a9   : > { %1275 = vst [vmem:[%s2064_s19 + $0xa0] sm:$0xff] %v930_v30  ;;  %v932_v33 = vadd.f32 %v2047_v21, %v674_v32  ;;  %v2134_v21 = vpop.f32.mrf.mxu1 }
 0x1aa   : > { %v678_v18 = vpop.f32.mrf.mxu0 }
 0x1ab   : > { %1276 = vst [vmem:[%s2064_s19 + $0xa8] sm:$0xff] %v932_v33  ;;  %v936_v35 = vadd.f32 %v2049_v22, %v678_v18 }
 0x1ac   : > { %v680_v36 = vpop.f32.mrf.mxu0 }
 0x1ad   : > { %1277 = vst [vmem:[%s2064_s19 + $0xb0] sm:$0xff] %v936_v35  ;;  %v938_v38 = vadd.f32 %v2051_v23, %v680_v36  ;;  %v2140_v23 = vpop.f32.mrf.mxu1 }
 0x1ae   : > { %v684_v20 = vpop.f32.mrf.mxu0 }
 0x1af   : > { %1278 = vst [vmem:[%s2064_s19 + $0xb8] sm:$0xff] %v938_v38  ;;  %v942_v39 = vadd.f32 %v2053_v24, %v684_v20 }
 0x1b0   : > { %v686_v41 = vpop.f32.mrf.mxu0 }
 0x1b1   : > { %1279 = vst [vmem:[%s2064_s19 + $0xc0] sm:$0xff] %v942_v39  ;;  %v944_v42 = vadd.f32 %v2055_v25, %v686_v41  ;;  %v1007_v25 = vpop.f32.mrf.mxu1 }
 0x1b2   : > { %v690_v22 = vpop.f32.mrf.mxu0 }
 0x1b3   : > { %1280 = vst [vmem:[%s2064_s19 + $0xc8] sm:$0xff] %v944_v42  ;;  %v948_v44 = vadd.f32 %v2058_v26, %v690_v22  ;;  %v1009_v56 = vpop.f32.mrf.mxu1 }
 0x1b4   : > { %v692_v45 = vpop.f32.mrf.mxu0 }
 0x1b5   : > { %1281 = vst [vmem:[%s2064_s19 + $0xd0] sm:$0xff] %v948_v44  ;;  %v950_v47 = vadd.f32 %v2060_v28, %v692_v45  ;;  %v1013_v59 = vpop.f32.mrf.mxu1 }
 0x1b6   : > { %v696_v24 = vpop.f32.mrf.mxu0 }
 0x1b7   : > { %1282 = vst [vmem:[%s2064_s19 + $0xd8] sm:$0xff] %v950_v47  ;;  %v954_v48 = vadd.f32 %v2062_v31, %v696_v24  ;;  %v1015_v63 = vpop.f32.mrf.mxu1 }
 0x1b8   : > { %v698_v50 = vpop.f32.mrf.mxu0 }
 0x1b9   : > { %1283 = vst [vmem:[%s2064_s19 + $0xe0] sm:$0xff] %v954_v48  ;;  %v956_v51 = vadd.f32 %v2067_v34, %v698_v50  ;;  %v1019_v3 = vpop.f32.mrf.mxu1 }
 0x1ba   : > { %v702_v26 = vpop.f32.mrf.mxu0 }
 0x1bb   : > { %1284 = vst [vmem:[%s2064_s19 + $0xe8] sm:$0xff] %v956_v51  ;;  %v960_v53 = vadd.f32 %v2070_v37, %v702_v26  ;;  %v1021_v7 = vpop.f32.mrf.mxu1 }
 0x1bc   : > { %v704_v54 = vpop.f32.mrf.mxu0 }
 0x1bd   : > { %1285 = vst [vmem:[%s2064_s19 + $0xf0] sm:$0xff] %v960_v53  ;;  %v962_v28 = vadd.f32 %v2073_v40, %v704_v54  ;;  %v1025_v10 = vpop.f32.mrf.mxu1 }
 0x1be   : > { %v708_v57 = vpop.f32.mrf.mxu0 }
 0x1bf   : > { %1286 = vst [vmem:[%s2064_s19 + $0xf8] sm:$0xff] %v962_v28  ;;  %v966_v31 = vadd.f32 %v2076_v43, %v708_v57  ;;  %v1027_v14 = vpop.f32.mrf.mxu1 }
 0x1c0   : > { %v710_v58 = vpop.f32.mrf.mxu0 }
 0x1c1   : > { %1287 = vst [vmem:[%s2064_s19 + $0x100] sm:$0xff] %v966_v31  ;;  %v968_v34 = vadd.f32 %v2079_v46, %v710_v58  ;;  %v1031_v16 = vpop.f32.mrf.mxu1 }
 0x1c2   : > { %v714_v61 = vpop.f32.mrf.mxu0 }
 0x1c3   : > { %1288 = vst [vmem:[%s2064_s19 + $0x108] sm:$0xff] %v968_v34  ;;  %v972_v37 = vadd.f32 %v2082_v49, %v714_v61  ;;  %v1033_v33 = vpop.f32.mrf.mxu1 }
 0x1c4   : > { %v716_v62 = vpop.f32.mrf.mxu0 }
 0x1c5   : > { %1289 = vst [vmem:[%s2064_s19 + $0x110] sm:$0xff] %v972_v37  ;;  %v974_v40 = vadd.f32 %v2085_v52, %v716_v62  ;;  %v1037_v38 = vpop.f32.mrf.mxu1 }
 0x1c6   : > { %v720_v0 = vpop.f32.mrf.mxu0 }
 0x1c7   : > { %1290 = vst [vmem:[%s2064_s19 + $0x118] sm:$0xff] %v974_v40  ;;  %v978_v43 = vadd.f32 %v2088_v55, %v720_v0  ;;  %v1039_v42 = vpop.f32.mrf.mxu1 }
 0x1c8   : > { %v722_v2 = vpop.f32.mrf.mxu0 }
 0x1c9   : > { %1291 = vst [vmem:[%s2064_s19 + $0x120] sm:$0xff] %v978_v43  ;;  %v980_v46 = vadd.f32 %v2092_v60, %v722_v2  ;;  %v1043_v47 = vpop.f32.mrf.mxu1 }
 0x1ca   : > { %v726_v4 = vpop.f32.mrf.mxu0 }
 0x1cb   : > { %1292 = vst [vmem:[%s2064_s19 + $0x128] sm:$0xff] %v980_v46  ;;  %v984_v49 = vadd.f32 %v2098_v1, %v726_v4  ;;  %v1045_v51 = vpop.f32.mrf.mxu1 }
 0x1cc   : > { %v728_v5 = vpop.f32.mrf.mxu0 }
 0x1cd   : > { %1293 = vst [vmem:[%s2064_s19 + $0x130] sm:$0xff] %v984_v49  ;;  %v986_v52 = vadd.f32 %v2104_v6, %v728_v5  ;;  %v1049_v28 = vpop.f32.mrf.mxu1 }
 0x1ce   : > { %v732_v8 = vpop.f32.mrf.mxu0 }
 0x1cf   : > { %1294 = vst [vmem:[%s2064_s19 + $0x138] sm:$0xff] %v986_v52  ;;  %v990_v55 = vadd.f32 %v2110_v11, %v732_v8  ;;  %v1051_v34 = vpop.f32.mrf.mxu1 }
 0x1d0   : > { %v734_v9 = vpop.f32.mrf.mxu0 }
 0x1d1   : > { %1295 = vst [vmem:[%s2064_s19 + $0x140] sm:$0xff] %v990_v55  ;;  %v992_v60 = vadd.f32 %v2116_v15, %v734_v9  ;;  %v1055_v40 = vpop.f32.mrf.mxu1 }
 0x1d2   : > { %v738_v12 = vpop.f32.mrf.mxu0 }
 0x1d3   : > { %1296 = vst [vmem:[%s2064_s19 + $0x148] sm:$0xff] %v992_v60  ;;  %v996_v1 = vadd.f32 %v2122_v17, %v738_v12 }
 0x1d4   : > { %v740_v13 = vpop.f32.mrf.mxu0 }
 0x1d5   : > { %1297 = vst [vmem:[%s2064_s19 + $0x150] sm:$0xff] %v996_v1  ;;  %v998_v6 = vadd.f32 %v2128_v19, %v740_v13 }
 0x1d6   : > { %v744_v27 = vpop.f32.mrf.mxu0 }
 0x1d7   : > { %1298 = vst [vmem:[%s2064_s19 + $0x158] sm:$0xff] %v998_v6  ;;  %v1002_v11 = vadd.f32 %v2134_v21, %v744_v27 }
 0x1d8   : > { %v746_v29 = vpop.f32.mrf.mxu0 }
 0x1d9   : > { %1299 = vst [vmem:[%s2064_s19 + $0x160] sm:$0xff] %v1002_v11  ;;  %v1004_v15 = vadd.f32 %v2140_v23, %v746_v29 }
 0x1da   : > { %v750_v30 = vpop.f32.mrf.mxu0 }
 0x1db   : > { %1300 = vst [vmem:[%s2064_s19 + $0x168] sm:$0xff] %v1004_v15  ;;  %v1008_v32 = vadd.f32 %v1007_v25, %v750_v30 }
 0x1dc   : > { %v752_v17 = vpop.f32.mrf.mxu0 }
 0x1dd   : > { %1301 = vst [vmem:[%s2064_s19 + $0x170] sm:$0xff] %v1008_v32  ;;  %v1010_v18 = vadd.f32 %v1009_v56, %v752_v17 }
 0x1de   : > { %v756_v35 = vpop.f32.mrf.mxu0 }
 0x1df   : > { %1302 = vst [vmem:[%s2064_s19 + $0x178] sm:$0xff] %v1010_v18  ;;  %v1014_v36 = vadd.f32 %v1013_v59, %v756_v35 }
 0x1e0   : > { %v758_v19 = vpop.f32.mrf.mxu0 }
 0x1e1   : > { %1303 = vst [vmem:[%s2064_s19 + $0x180] sm:$0xff] %v1014_v36  ;;  %v1016_v20 = vadd.f32 %v1015_v63, %v758_v19 }
 0x1e2   : > { %v762_v39 = vpop.f32.mrf.mxu0 }
 0x1e3   : > { %1304 = vst [vmem:[%s2064_s19 + $0x188] sm:$0xff] %v1016_v20  ;;  %v1020_v41 = vadd.f32 %v1019_v3, %v762_v39  ;;  %v1057_v3 = vpop.f32.mrf.mxu1 }
 0x1e4   : > { %v764_v21 = vpop.f32.mrf.mxu0 }
 0x1e5   : > { %1305 = vst [vmem:[%s2064_s19 + $0x190] sm:$0xff] %v1020_v41  ;;  %v1022_v22 = vadd.f32 %v1021_v7, %v764_v21 }
 0x1e6   : > { %v768_v44 = vpop.f32.mrf.mxu0 }
 0x1e7   : > { %1306 = vst [vmem:[%s2064_s19 + $0x198] sm:$0xff] %v1022_v22  ;;  %v1026_v45 = vadd.f32 %v1025_v10, %v768_v44 }
 0x1e8   : > { %v770_v23 = vpop.f32.mrf.mxu0 }
 0x1e9   : > { %1307 = vst [vmem:[%s2064_s19 + $0x1a0] sm:$0xff] %v1026_v45  ;;  %v1028_v24 = vadd.f32 %v1027_v14, %v770_v23 }
 0x1ea   : > { %v774_v48 = vpop.f32.mrf.mxu0 }
 0x1eb   : > { %1308 = vst [vmem:[%s2064_s19 + $0x1a8] sm:$0xff] %v1028_v24  ;;  %v1032_v50 = vadd.f32 %v1031_v16, %v774_v48 }
 0x1ec   : > { %v776_v25 = vpop.f32.mrf.mxu0 }
 0x1ed   : > { %1309 = vst [vmem:[%s2064_s19 + $0x1b0] sm:$0xff] %v1032_v50  ;;  %v1034_v26 = vadd.f32 %v1033_v33, %v776_v25 }
 0x1ee   : > { %v780_v53 = vpop.f32.mrf.mxu0 }
 0x1ef   : > { %1310 = vst [vmem:[%s2064_s19 + $0x1b8] sm:$0xff] %v1034_v26  ;;  %v1038_v54 = vadd.f32 %v1037_v38, %v780_v53 }
 0x1f0   : > { %v782_v56 = vpop.f32.mrf.mxu0 }
 0x1f1   : > { %1311 = vst [vmem:[%s2064_s19 + $0x1c0] sm:$0xff] %v1038_v54  ;;  %v1040_v57 = vadd.f32 %v1039_v42, %v782_v56 }
 0x1f2   : > { %v786_v31 = vpop.f32.mrf.mxu0 }
 0x1f3   : > { %1312 = vst [vmem:[%s2064_s19 + $0x1c8] sm:$0xff] %v1040_v57  ;;  %v1044_v58 = vadd.f32 %v1043_v47, %v786_v31 }
 0x1f4   : > { %v788_v59 = vpop.f32.mrf.mxu0 }
 0x1f5   : > { %1313 = vst [vmem:[%s2064_s19 + $0x1d0] sm:$0xff] %v1044_v58  ;;  %v1046_v61 = vadd.f32 %v1045_v51, %v788_v59 }
 0x1f6   : > { %v792_v37 = vpop.f32.mrf.mxu0 }
 0x1f7   : > { %1314 = vst [vmem:[%s2064_s19 + $0x1d8] sm:$0xff] %v1046_v61  ;;  %v1050_v62 = vadd.f32 %v1049_v28, %v792_v37 }
 0x1f8   : > { %v794_v63 = vpop.f32.mrf.mxu0 }
 0x1f9   : > { %1315 = vst [vmem:[%s2064_s19 + $0x1e0] sm:$0xff] %v1050_v62  ;;  %v1052_v0 = vadd.f32 %v1051_v34, %v794_v63 }
 0x1fa   : > { %v798_v43 = vpop.f32.mrf.mxu0 }
 0x1fb   : > { %1316 = vst [vmem:[%s2064_s19 + $0x1e8] sm:$0xff] %v1052_v0  ;;  %v1056_v2 = vadd.f32 %v1055_v40, %v798_v43 }
 0x1fc   : > { %v800_v46 = vpop.f32.mrf.mxu0 }
 0x1fd   : > { %1317 = vst [vmem:[%s2064_s19 + $0x1f0] sm:$0xff] %v1056_v2  ;;  %v1058_v4 = vadd.f32 %v1057_v3, %v800_v46 }
 0x1ff   : > { %1318 = vst [vmem:[%s2064_s19 + $0x1f8] sm:$0xff] %v1058_v4 }
 0x200   : > { %1703 = shalt.err (!%p1700_p4)
}
 0x201   : > { %s1704_s3 = scalar_lea.hbm %s2202_s23, 8192  ;;  %s1708_s15 = scalar_lea.hbm %s2256_s2, 16384 }
 0x202   : > { %p1705_p6 = scmp.ne.s32.totalorder %s2202_s23, %s1704_s3  ;;  %p1709_p0 = scmp.lt.s32.totalorder %s2202_s23, %s2256_s2 }
 0x203   : > { %p1710_p3 = scmp.lt.s32.totalorder %s1708_s15, %s1704_s3 }
 0x204   : > { %p1706_p9 = pnand %p1705_p6, %p1884_p13 }
 0x205   : > { %p1711_p1 = por %p1710_p3, %p1709_p0 }
 0x206   : > { %p1707_p12 = pneg %p1706_p9 }
 0x208   : > { %p1712_p8 = pnand %p1711_p1, %p1707_p12 }
 0x20a   : > { %1715 = shalt.err (!%p1712_p8)
}
 0x20b   : > { %s1781_s17 = smov 256   ;;  %s1782_s19 = smov 16  }
 0x20c   : > { %1565 = dma.vmem_to_hbm [thread:$0]  (%p1884_p13), %s2204_s27, 8192, %s2202_s23, %s1320_s12, %s1781_s17, %s1781_s17, %s1782_s19  }
 0x20d PF: > { %s1351_s21 = sand.u32 1, %s1754_s9   ;;  %p2267_p11 = scmp.ne.s32.totalorder %s2261_s20, 0 }
 0x20e   : > { %s1352_s28 = scalar_lea.sflag [#allocation5], %s1351_s21 }
 0x20f   : > { %p1576_p2 = pnand %p1445_p10, %p2267_p11 }
 0x211   : > { %p1577_p5 = pneg %p1576_p2 }
 0x213   : > { %1749 = dma.done.wait (%p1577_p5), %s1352_s28, 8192  }
 0x214   : > { %1751 = vsyncadd (%p1577_p5), %s1352_s28, 4294959104  ;;  %s19_s14 = sadd.s32 1, %s1774_s14   ;;  %s2268_s9 = smov %s1758_s10 }
 0x215   : > { %p16_p7 = scmp.ge.s32.totalorder %s19_s14, 4   ;;  %s2269_s10 = smov %s1762_s11 }
 0x216   : > { %s2270_s11 = smov %s1893_s8  ;;  %s2271_s12 = smov %s1770_s13 }
 0x217   : > { %s2272_s13 = smov %s2274_s25  ;;  %18 = sbr.rel (!%p16_p7) target bundleno = 7 (0x7), region = 86 }
 0x21c   :  { %1357 = vsyncpa [#allocation4], 1 }
 0x21d   :  { %1359 = vsyncpa [#allocation4 + $0x1], 1 }
 0x21e   :  { %1360 = vsyncpa [#allocation7], 1 }
 0x21f   :  { %1361 = vsyncpa [#allocation5], 1 }
 0x220   :  { %1363 = vsyncpa [#allocation5 + $0x1], 1 }

</bundles_post_ra>
